<compile_context>
chip_gen: v5e
topology: v5e:2x2
jax: 0.10.0
libtpu: 0.0.40
codegen_flags: <defaults>
</compile_context>

<pallas_src>
import functools

import jax
import jax.numpy as jnp
from jax import lax
from jax.experimental import pallas as pl
from jax.experimental.pallas import tpu as pltpu


# ----------------------------- Pallas kernel --------------------------------

def _gelayer_s1_kernel(xp_ref, band1_ref, s1_ref, b1_ref, band2_ref, b2_ref,
                       o_ref, *, TH, H, W, C):
    """Fused GELayerS1 for one (batch item, output-row tile).

    Row-flattened layout: an image row of width Wr occupies Wr*C lanes, so a
    3x3 stride-1 'same' conv is 3 banded matmuls (one per kernel row kh).

    xp_ref    : (H+4, (W+4)*C)        zero-padded (pad=2) input, one batch item
    band1_ref : (3, (W+4)*C, (W+2)*C) conv1 taps as banded matrices (per kh)
    s1_ref    : (1, (W+2)*C)          conv1 folded BN scale (0 at dw-pad cols)
    b1_ref    : (1, (W+2)*C)          conv1 folded BN bias  (0 at dw-pad cols)
    band2_ref : (3, (W+2)*C, W*C)     (dw3x3+BNd) o (1x1+BN2) collapsed, banded
    b2_ref    : (1, W*C)              collapsed bias of the dw+1x1 stage
    o_ref     : (TH, W*C)             output row tile
    """
    j = pl.program_id(1)
    row0 = pl.multiple_of(j * TH, TH)          # first output row of this tile

    # ---- Stage 1: conv1 = 3x3(s1,p1) + BN + ReLU over TH+2 fd rows (halo) ----
    acc1 = jnp.zeros((TH + 2, (W + 2) * C), jnp.float32)
    for kh in range(3):                                    # static, unrolled
        rows = xp_ref[pl.ds(row0 + kh, TH + 2), :]         # (TH+2, (W+4)*C)
        acc1 = acc1 + jnp.dot(rows, band1_ref[kh],
                              preferred_element_type=jnp.float32)
    fd = jnp.maximum(acc1 * s1_ref[...] + b1_ref[...], 0.0)
    # rows outside the image are the depthwise conv's zero padding of fd
    ridx = lax.broadcasted_iota(jnp.int32, (TH + 2, 1), 0) + (row0 - 1)
    fd = jnp.where(jnp.logical_and(ridx >= 0, ridx < H), fd, 0.0)

    # ---- Stage 2: (dw 3x3 + BNd) o (1x1 + BN2), residual, final ReLU --------
    acc2 = jnp.zeros((TH, W * C), jnp.float32)
    for kh in range(3):                                    # static, unrolled
        acc2 = acc2 + jnp.dot(fd[kh:kh + TH, :], band2_ref[kh],
                              preferred_element_type=jnp.float32)
    xres = xp_ref[pl.ds(row0 + 2, TH), :][:, 2 * C:(W + 2) * C]  # residual rows
    o_ref[...] = jnp.maximum(acc2 + b2_ref[...] + xres, 0.0).astype(o_ref.dtype)


# ----------------------------- Wrapper --------------------------------------

def _pick_row_tile(h):
    """Largest divisor of h that is a multiple of 8 and <= 32 (VMEM-friendly)."""
    for th in (32, 24, 16, 8):
        if h % th == 0:
            return th
    return h


def _banded(taps, out_w, c):
    """taps: (3, 3, C, C) [kh, kw, cin, cout] -> (3, (out_w+2)*C, out_w*C).

    band[kh][u*C+ci, v*C+co] = taps[kh, u-v, ci, co] if 0 <= u-v < 3 else 0,
    so `row_slab @ band[kh]` applies all 3 kw taps of kernel row kh to whole
    image rows in a single matmul (stride-1 'same' conv along width).
    """
    in_w = out_w + 2
    diff = jnp.arange(in_w)[:, None] - jnp.arange(out_w)[None, :]   # (in_w,out_w)
    sel = (diff[:, :, None] == jnp.arange(3)[None, None, :]).astype(jnp.float32)
    band = jnp.einsum("uvk,hkio->huivo", sel, taps)        # (3,in_w,C,out_w,C)
    return band.reshape(3, in_w * c, out_w * c)


def gelayer_s1_forward(x_nchw, kp):
    """GELayerS1 forward. x: (N, C, H, W) float32; kp: folded kernel params."""
    n, c, h, w = x_nchw.shape
    assert c == kp["w1"].shape[-1], "GELayerS1 needs in_channel == out_channel."

    # NHWC, zero-pad by 2, flatten each padded row to (W+4)*C lanes.
    x = jnp.transpose(x_nchw, (0, 2, 3, 1)).astype(jnp.float32)
    xp = jnp.pad(x, ((0, 0), (2, 2), (2, 2), (0, 0)))
    xp = xp.reshape(n, h + 4, (w + 4) * c)

    # Banded weights + row-flattened BN vectors (tiny; built once per shape).
    band1 = _banded(kp["w1"], w + 2, c)                    # (3,(W+4)C,(W+2)C)
    band2 = _banded(kp["m2"], w, c)                        # (3,(W+2)C, W*C)
    colmask = ((jnp.arange(w + 2) >= 1) & (jnp.arange(w + 2) <= w))
    colmask = colmask.astype(jnp.float32)[:, None]         # (W+2, 1)
    s1f = (colmask * kp["s1"][None, :]).reshape(1, (w + 2) * c)
    b1f = (colmask * kp["b1"][None, :]).reshape(1, (w + 2) * c)
    b2f = jnp.broadcast_to(kp["b2"][None, :], (w, c)).reshape(1, w * c)

    th = _pick_row_tile(h)
    kernel = functools.partial(_gelayer_s1_kernel, TH=th, H=h, W=w, C=c)
    out = pl.pallas_call(
        kernel,
        out_shape=jax.ShapeDtypeStruct((n, h, w * c), jnp.float32),
        grid=(n, h // th),
        in_specs=[
            pl.BlockSpec((None, h + 4, (w + 4) * c), lambda ni, ji: (ni, 0, 0)),
            pl.BlockSpec((3, (w + 4) * c, (w + 2) * c), lambda ni, ji: (0, 0, 0)),
            pl.BlockSpec((1, (w + 2) * c), lambda ni, ji: (0, 0)),
            pl.BlockSpec((1, (w + 2) * c), lambda ni, ji: (0, 0)),
            pl.BlockSpec((3, (w + 2) * c, w * c), lambda ni, ji: (0, 0, 0)),
            pl.BlockSpec((1, w * c), lambda ni, ji: (0, 0)),
        ],
        out_specs=pl.BlockSpec((None, th, w * c), lambda ni, ji: (ni, ji, 0)),
        compiler_params=pltpu.CompilerParams(
            dimension_semantics=("parallel", "parallel")),
    )(xp, band1, s1f, b1f, band2, b2f)
    return jnp.transpose(out.reshape(n, h, w, c), (0, 3, 1, 2))    # back to NCHW


# ----------------------------- Parameters -----------------------------------

def make_gelayer_params(key, c, e=6):
    """Raw GELayerS1 parameters in PyTorch layouts (OIHW weights, BN stats)."""
    kw1, kwd, kw2, kbn1, kbnd, kbn2 = jax.random.split(key, 6)

    def bn_params(k, nch):
        kg, kb, km, kv = jax.random.split(k, 4)
        return dict(
            gamma=jax.random.uniform(kg, (nch,), jnp.float32, 0.5, 1.5),
            beta=jax.random.normal(kb, (nch,), jnp.float32) * 0.1,
            mean=jax.random.normal(km, (nch,), jnp.float32) * 0.1,
            var=jax.random.uniform(kv, (nch,), jnp.float32, 0.5, 1.5),
        )

    return dict(
        w1=jax.random.normal(kw1, (c, c, 3, 3), jnp.float32) * 0.2,        # conv1
        wd=jax.random.normal(kwd, (c * e, 1, 3, 3), jnp.float32) * 0.2,    # dw 3x3
        w2=jax.random.normal(kw2, (c, c * e, 1, 1), jnp.float32) * 0.2,    # 1x1
        bn1=bn_params(kbn1, c),
        bnd=bn_params(kbnd, c * e),
        bn2=bn_params(kbn2, c),
    )


def fold_gelayer_params(raw, c, e=6, eps=1e-5):
    """Fold eval-mode BNs and collapse (depthwise+BNd, 1x1+BN2) per-tap."""
    def fold_bn(bn):
        s = bn["gamma"] / jnp.sqrt(bn["var"] + eps)
        return s, bn["beta"] - bn["mean"] * s

    s1, b1 = fold_bn(raw["bn1"])
    sd, bd = fold_bn(raw["bnd"])
    s2, b2 = fold_bn(raw["bn2"])

    # conv1 (O, I, 3, 3) -> (kh, kw, cin, cout)
    w1 = jnp.transpose(raw["w1"], (2, 3, 1, 0))
    # depthwise (C*E, 1, 3, 3) -> (kh, kw, C, E); PyTorch group order is c*E + e.
    wd = jnp.transpose(raw["wd"].reshape(c, e, 3, 3), (2, 3, 0, 1))
    # 1x1 (O=C, I=C*E, 1, 1) -> (C*E, C)
    w2 = jnp.transpose(raw["w2"][:, :, 0, 0], (1, 0))

    # (y*sd + bd) @ w2 * s2 + b2  ==  y @ w2_eff + b2_eff  (no ReLU in between)
    w2_eff = sd[:, None] * w2 * s2[None, :]                  # (C*E, C)
    b2_eff = (bd @ w2) * s2 + b2                             # (C,)
    # Collapse the depthwise taps through the folded 1x1:
    m2 = jnp.einsum("hwce,ceo->hwco", wd, w2_eff.reshape(c, e, c))   # (3,3,C,C)

    return dict(w1=w1, s1=s1, b1=b1, m2=m2, b2=b2_eff)


# ----------------------------- Pure-JAX reference ---------------------------

def _conv_bn_ref(x, w, bn, *, stride=1, padding=1, groups=1, relu=True, eps=1e-5):
    y = lax.conv_general_dilated(
        x, w, window_strides=(stride, stride),
        padding=[(padding, padding), (padding, padding)],
        dimension_numbers=("NCHW", "OIHW", "NCHW"),
        feature_group_count=groups)
    scale = bn["gamma"] / jnp.sqrt(bn["var"] + eps)
    bias = bn["beta"] - bn["mean"] * scale
    y = y * scale[None, :, None, None] + bias[None, :, None, None]
    return jnp.maximum(y, 0.0) if relu else y


def gelayer_s1_reference(x_nchw, raw, c):
    fd = _conv_bn_ref(x_nchw, raw["w1"], raw["bn1"], relu=True)
    fd = _conv_bn_ref(fd, raw["wd"], raw["bnd"], groups=c, relu=False)
    fd = _conv_bn_ref(fd, raw["w2"], raw["bn2"], padding=0, relu=False)
    return jnp.maximum(fd + x_nchw, 0.0)


# ----------------------------- Main ------------------------------------------

if __name__ == "__main__":
    key = jax.random.PRNGKey(0)
    kx, kparams = jax.random.split(key)

    N, C, H, W, E = 2, 4, 16, 16, 6      # GELayerS1(in=4, out=4, exp_ratio=6)
    x = jax.random.normal(kx, (N, C, H, W), jnp.float32)
    raw = make_gelayer_params(kparams, C, E)
    folded = fold_gelayer_params(raw, C, E)

    out = jax.jit(gelayer_s1_forward)(x, folded)
    jax.block_until_ready(out)

    assert out.shape == (N, C, H, W), out.shape
    assert bool(jnp.all(jnp.isfinite(out)))
    assert bool(jnp.all(out >= 0.0))          # final op is a ReLU

    ref = gelayer_s1_reference(x, raw, C)
    max_err = float(jnp.max(jnp.abs(out - ref)))
    assert max_err < 2e-3, f"mismatch vs reference convs: max abs err {max_err}"
    print("KERNEL_OK")
</pallas_src>

<mosaic_0001>
module attributes {stable_mosaic.version = 11 : i64} {
  func.func @_gelayer_s1_kernel(%arg0: i32, %arg1: i32, %arg2: memref<1x20x80xf32, #tpu.memory_space<vmem>>, %arg3: memref<3x80x72xf32, #tpu.memory_space<vmem>>, %arg4: memref<1x72xf32, #tpu.memory_space<vmem>>, %arg5: memref<1x72xf32, #tpu.memory_space<vmem>>, %arg6: memref<3x72x64xf32, #tpu.memory_space<vmem>>, %arg7: memref<1x64xf32, #tpu.memory_space<vmem>>, %arg8: memref<1x16x64xf32, #tpu.memory_space<vmem>>) attributes {dimension_semantics = [#tpu.dimension_semantics<parallel>, #tpu.dimension_semantics<parallel>], iteration_bounds = array<i64: 2, 1>, scalar_prefetch = 0 : i64, scratch_operands = 0 : i64, tpu.core_type = #tpu.core_type<tc>, window_params = [{transform_indices = @transform_0, window_bounds = array<i64: 1, 20, 80>}, {pipeline_mode = #tpu.pipeline_mode<synchronous>, transform_indices = @transform_1, window_bounds = array<i64: 3, 80, 72>}, {pipeline_mode = #tpu.pipeline_mode<synchronous>, transform_indices = @transform_2, window_bounds = array<i64: 1, 72>}, {pipeline_mode = #tpu.pipeline_mode<synchronous>, transform_indices = @transform_3, window_bounds = array<i64: 1, 72>}, {pipeline_mode = #tpu.pipeline_mode<synchronous>, transform_indices = @transform_4, window_bounds = array<i64: 3, 72, 64>}, {pipeline_mode = #tpu.pipeline_mode<synchronous>, transform_indices = @transform_5, window_bounds = array<i64: 1, 64>}, {transform_indices = @transform_6, window_bounds = array<i64: 1, 16, 64>}]} {
    %c16_i32 = arith.constant 16 : i32
    %0 = arith.muli %arg1, %c16_i32 : i32
    %1 = tpu.assume_multiple %0, 16 : i32
    %cst = arith.constant 0.000000e+00 : f32
    %2 = vector.broadcast %cst : f32 to vector<18x72xf32>
    %c0_i32 = arith.constant 0 : i32
    %3 = arith.addi %1, %c0_i32 : i32
    %c0 = arith.constant 0 : index
    %4 = arith.index_cast %3 : i32 to index
    %c0_0 = arith.constant 0 : index
    %5 = vector.load %arg2[%c0, %4, %c0_0] : memref<1x20x80xf32, #tpu.memory_space<vmem>>, vector<1x18x80xf32>
    %6 = vector.shape_cast %5 : vector<1x18x80xf32> to vector<18x80xf32>
    %c0_1 = arith.constant 0 : index
    %c0_2 = arith.constant 0 : index
    %c0_3 = arith.constant 0 : index
    %7 = vector.load %arg3[%c0_1, %c0_2, %c0_3] : memref<3x80x72xf32, #tpu.memory_space<vmem>>, vector<1x80x72xf32>
    %8 = vector.shape_cast %7 : vector<1x80x72xf32> to vector<80x72xf32>
    %cst_4 = arith.constant dense<0.000000e+00> : vector<18x72xf32>
    %9 = tpu.matmul %6, %8, %cst_4 {dimension_numbers = #tpu.dot_dimension_numbers<[1], [0], [0], [1], [0, 0, 1, 1], [], []>} : vector<18x80xf32>, vector<80x72xf32>, vector<18x72xf32> -> vector<18x72xf32>
    %10 = arith.addf %2, %9 : vector<18x72xf32>
    %c1_i32 = arith.constant 1 : i32
    %11 = arith.addi %1, %c1_i32 : i32
    %c0_5 = arith.constant 0 : index
    %12 = arith.index_cast %11 : i32 to index
    %c0_6 = arith.constant 0 : index
    %13 = vector.load %arg2[%c0_5, %12, %c0_6] : memref<1x20x80xf32, #tpu.memory_space<vmem>>, vector<1x18x80xf32>
    %14 = vector.shape_cast %13 : vector<1x18x80xf32> to vector<18x80xf32>
    %c1 = arith.constant 1 : index
    %c0_7 = arith.constant 0 : index
    %c0_8 = arith.constant 0 : index
    %15 = vector.load %arg3[%c1, %c0_7, %c0_8] : memref<3x80x72xf32, #tpu.memory_space<vmem>>, vector<1x80x72xf32>
    %16 = vector.shape_cast %15 : vector<1x80x72xf32> to vector<80x72xf32>
    %cst_9 = arith.constant dense<0.000000e+00> : vector<18x72xf32>
    %17 = tpu.matmul %14, %16, %cst_9 {dimension_numbers = #tpu.dot_dimension_numbers<[1], [0], [0], [1], [0, 0, 1, 1], [], []>} : vector<18x80xf32>, vector<80x72xf32>, vector<18x72xf32> -> vector<18x72xf32>
    %18 = arith.addf %10, %17 : vector<18x72xf32>
    %c2_i32 = arith.constant 2 : i32
    %19 = arith.addi %1, %c2_i32 : i32
    %c0_10 = arith.constant 0 : index
    %20 = arith.index_cast %19 : i32 to index
    %c0_11 = arith.constant 0 : index
    %21 = vector.load %arg2[%c0_10, %20, %c0_11] : memref<1x20x80xf32, #tpu.memory_space<vmem>>, vector<1x18x80xf32>
    %22 = vector.shape_cast %21 : vector<1x18x80xf32> to vector<18x80xf32>
    %c2 = arith.constant 2 : index
    %c0_12 = arith.constant 0 : index
    %c0_13 = arith.constant 0 : index
    %23 = vector.load %arg3[%c2, %c0_12, %c0_13] : memref<3x80x72xf32, #tpu.memory_space<vmem>>, vector<1x80x72xf32>
    %24 = vector.shape_cast %23 : vector<1x80x72xf32> to vector<80x72xf32>
    %cst_14 = arith.constant dense<0.000000e+00> : vector<18x72xf32>
    %25 = tpu.matmul %22, %24, %cst_14 {dimension_numbers = #tpu.dot_dimension_numbers<[1], [0], [0], [1], [0, 0, 1, 1], [], []>} : vector<18x80xf32>, vector<80x72xf32>, vector<18x72xf32> -> vector<18x72xf32>
    %26 = arith.addf %18, %25 : vector<18x72xf32>
    %c0_15 = arith.constant 0 : index
    %c0_16 = arith.constant 0 : index
    %27 = vector.load %arg4[%c0_15, %c0_16] : memref<1x72xf32, #tpu.memory_space<vmem>>, vector<1x72xf32>
    %28 = vector.broadcast %27 : vector<1x72xf32> to vector<18x72xf32>
    %29 = arith.mulf %26, %28 : vector<18x72xf32>
    %c0_17 = arith.constant 0 : index
    %c0_18 = arith.constant 0 : index
    %30 = vector.load %arg5[%c0_17, %c0_18] : memref<1x72xf32, #tpu.memory_space<vmem>>, vector<1x72xf32>
    %31 = vector.broadcast %30 : vector<1x72xf32> to vector<18x72xf32>
    %32 = arith.addf %29, %31 : vector<18x72xf32>
    %cst_19 = arith.constant 0.000000e+00 : f32
    %33 = vector.broadcast %cst_19 : f32 to vector<18x72xf32>
    %34 = arith.maximumf %32, %33 : vector<18x72xf32>
    %35 = tpu.iota {dimensions = array<i32: 0>} : vector<18x1xi32>
    %c1_i32_20 = arith.constant 1 : i32
    %36 = arith.subi %1, %c1_i32_20 : i32
    %37 = vector.broadcast %36 : i32 to vector<18x1xi32>
    %38 = arith.addi %35, %37 : vector<18x1xi32>
    %c0_i32_21 = arith.constant 0 : i32
    %39 = vector.broadcast %c0_i32_21 : i32 to vector<18x1xi32>
    %40 = arith.cmpi sge, %38, %39 : vector<18x1xi32>
    %c16_i32_22 = arith.constant 16 : i32
    %41 = vector.broadcast %c16_i32_22 : i32 to vector<18x1xi32>
    %42 = arith.cmpi slt, %38, %41 : vector<18x1xi32>
    %43 = arith.andi %40, %42 : vector<18x1xi1>
    %cst_23 = arith.constant 0.000000e+00 : f32
    %44 = vector.shape_cast %43 : vector<18x1xi1> to vector<18x1xi1>
    %45 = vector.broadcast %44 : vector<18x1xi1> to vector<18x72xi1>
    %46 = vector.broadcast %cst_23 : f32 to vector<18x72xf32>
    %47 = arith.select %45, %34, %46 : vector<18x72xi1>, vector<18x72xf32>
    %cst_24 = arith.constant 0.000000e+00 : f32
    %48 = vector.broadcast %cst_24 : f32 to vector<16x64xf32>
    %49 = vector.extract_strided_slice %47 {offsets = [0, 0], sizes = [16, 72], strides = [1, 1]} : vector<18x72xf32> to vector<16x72xf32>
    %c0_25 = arith.constant 0 : index
    %c0_26 = arith.constant 0 : index
    %c0_27 = arith.constant 0 : index
    %50 = vector.load %arg6[%c0_25, %c0_26, %c0_27] : memref<3x72x64xf32, #tpu.memory_space<vmem>>, vector<1x72x64xf32>
    %51 = vector.shape_cast %50 : vector<1x72x64xf32> to vector<72x64xf32>
    %cst_28 = arith.constant dense<0.000000e+00> : vector<16x64xf32>
    %52 = tpu.matmul %49, %51, %cst_28 {dimension_numbers = #tpu.dot_dimension_numbers<[1], [0], [0], [1], [0, 0, 1, 1], [], []>} : vector<16x72xf32>, vector<72x64xf32>, vector<16x64xf32> -> vector<16x64xf32>
    %53 = arith.addf %48, %52 : vector<16x64xf32>
    %54 = vector.extract_strided_slice %47 {offsets = [1, 0], sizes = [16, 72], strides = [1, 1]} : vector<18x72xf32> to vector<16x72xf32>
    %c1_29 = arith.constant 1 : index
    %c0_30 = arith.constant 0 : index
    %c0_31 = arith.constant 0 : index
    %55 = vector.load %arg6[%c1_29, %c0_30, %c0_31] : memref<3x72x64xf32, #tpu.memory_space<vmem>>, vector<1x72x64xf32>
    %56 = vector.shape_cast %55 : vector<1x72x64xf32> to vector<72x64xf32>
    %cst_32 = arith.constant dense<0.000000e+00> : vector<16x64xf32>
    %57 = tpu.matmul %54, %56, %cst_32 {dimension_numbers = #tpu.dot_dimension_numbers<[1], [0], [0], [1], [0, 0, 1, 1], [], []>} : vector<16x72xf32>, vector<72x64xf32>, vector<16x64xf32> -> vector<16x64xf32>
    %58 = arith.addf %53, %57 : vector<16x64xf32>
    %59 = vector.extract_strided_slice %47 {offsets = [2, 0], sizes = [16, 72], strides = [1, 1]} : vector<18x72xf32> to vector<16x72xf32>
    %c2_33 = arith.constant 2 : index
    %c0_34 = arith.constant 0 : index
    %c0_35 = arith.constant 0 : index
    %60 = vector.load %arg6[%c2_33, %c0_34, %c0_35] : memref<3x72x64xf32, #tpu.memory_space<vmem>>, vector<1x72x64xf32>
    %61 = vector.shape_cast %60 : vector<1x72x64xf32> to vector<72x64xf32>
    %cst_36 = arith.constant dense<0.000000e+00> : vector<16x64xf32>
    %62 = tpu.matmul %59, %61, %cst_36 {dimension_numbers = #tpu.dot_dimension_numbers<[1], [0], [0], [1], [0, 0, 1, 1], [], []>} : vector<16x72xf32>, vector<72x64xf32>, vector<16x64xf32> -> vector<16x64xf32>
    %63 = arith.addf %58, %62 : vector<16x64xf32>
    %c2_i32_37 = arith.constant 2 : i32
    %64 = arith.addi %1, %c2_i32_37 : i32
    %c0_38 = arith.constant 0 : index
    %65 = arith.index_cast %64 : i32 to index
    %c0_39 = arith.constant 0 : index
    %66 = vector.load %arg2[%c0_38, %65, %c0_39] : memref<1x20x80xf32, #tpu.memory_space<vmem>>, vector<1x16x80xf32>
    %67 = vector.shape_cast %66 : vector<1x16x80xf32> to vector<16x80xf32>
    %68 = vector.extract_strided_slice %67 {offsets = [0, 8], sizes = [16, 64], strides = [1, 1]} : vector<16x80xf32> to vector<16x64xf32>
    %c0_40 = arith.constant 0 : index
    %c0_41 = arith.constant 0 : index
    %69 = vector.load %arg7[%c0_40, %c0_41] : memref<1x64xf32, #tpu.memory_space<vmem>>, vector<1x64xf32>
    %70 = vector.broadcast %69 : vector<1x64xf32> to vector<16x64xf32>
    %71 = arith.addf %63, %70 : vector<16x64xf32>
    %72 = arith.addf %71, %68 : vector<16x64xf32>
    %cst_42 = arith.constant 0.000000e+00 : f32
    %73 = vector.broadcast %cst_42 : f32 to vector<16x64xf32>
    %74 = arith.maximumf %72, %73 : vector<16x64xf32>
    %c0_43 = arith.constant 0 : index
    %c0_44 = arith.constant 0 : index
    %c0_45 = arith.constant 0 : index
    %75 = vector.load %arg8[%c0_43, %c0_44, %c0_45] : memref<1x16x64xf32, #tpu.memory_space<vmem>>, vector<1x16x64xf32>
    %76 = vector.shape_cast %75 : vector<1x16x64xf32> to vector<16x64xf32>
    %77 = vector.shape_cast %74 : vector<16x64xf32> to vector<1x16x64xf32>
    tpu.vector_store %arg8[%c0_43, %c0_44, %c0_45], %77 {strides = array<i32>} : memref<1x16x64xf32, #tpu.memory_space<vmem>>, vector<1x16x64xf32>,
    return
  }
  func.func @transform_0(%arg0: i32, %arg1: i32) -> (i32, i32, i32) {
    %c0_i32 = arith.constant 0 : i32
    %c0_i32_0 = arith.constant 0 : i32
    %c0_i32_1 = arith.constant 0 : i32
    return %arg0, %c0_i32, %c0_i32_0 : i32, i32, i32
  }
  func.func @transform_1(%arg0: i32, %arg1: i32) -> (i32, i32, i32) {
    %c0_i32 = arith.constant 0 : i32
    %c0_i32_0 = arith.constant 0 : i32
    %c0_i32_1 = arith.constant 0 : i32
    %c0_i32_2 = arith.constant 0 : i32
    return %c0_i32, %c0_i32_0, %c0_i32_1 : i32, i32, i32
  }
  func.func @transform_2(%arg0: i32, %arg1: i32) -> (i32, i32) {
    %c0_i32 = arith.constant 0 : i32
    %c0_i32_0 = arith.constant 0 : i32
    %c0_i32_1 = arith.constant 0 : i32
    return %c0_i32, %c0_i32_0 : i32, i32
  }
  func.func @transform_3(%arg0: i32, %arg1: i32) -> (i32, i32) {
    %c0_i32 = arith.constant 0 : i32
    %c0_i32_0 = arith.constant 0 : i32
    %c0_i32_1 = arith.constant 0 : i32
    return %c0_i32, %c0_i32_0 : i32, i32
  }
  func.func @transform_4(%arg0: i32, %arg1: i32) -> (i32, i32, i32) {
    %c0_i32 = arith.constant 0 : i32
    %c0_i32_0 = arith.constant 0 : i32
    %c0_i32_1 = arith.constant 0 : i32
    %c0_i32_2 = arith.constant 0 : i32
    return %c0_i32, %c0_i32_0, %c0_i32_1 : i32, i32, i32
  }
  func.func @transform_5(%arg0: i32, %arg1: i32) -> (i32, i32) {
    %c0_i32 = arith.constant 0 : i32
    %c0_i32_0 = arith.constant 0 : i32
    %c0_i32_1 = arith.constant 0 : i32
    return %c0_i32, %c0_i32_0 : i32, i32
  }
  func.func @transform_6(%arg0: i32, %arg1: i32) -> (i32, i32, i32) {
    %c0_i32 = arith.constant 0 : i32
    %c0_i32_0 = arith.constant 0 : i32
    return %arg0, %arg1, %c0_i32 : i32, i32, i32
  }
}

</mosaic_0001>

<bundles_post_ra>
// kernel: gelayer_s1_forward.1
= control target key start
LH: loop header
LB: loop body
LE: loop exit
PB: predicated region body
PF: predicated region fallthrough
CT: control target
= control target key end

     0   :  { %s885_s21 = smov 0   ;;  %s887_s22 = smov 0   ;;  %s1125_s0 = inlined_call_operand.vmem [shape: f32[2,20,80], index: 0, kind: input, shape index: {}]   ;;  %s1126_s1 = inlined_call_operand.vmem [shape: f32[3,80,72], index: 1, kind: input, shape index: {}]   ;;  %s1127_s2 = inlined_call_operand.vmem [shape: f32[1,72], index: 2, kind: input, shape index: {}]   ;;  %s1128_s3 = inlined_call_operand.vmem [shape: f32[1,72], index: 3, kind: input, shape index: {}]   ;;  %s1129_s4 = inlined_call_operand.vmem [shape: f32[3,72,64], index: 4, kind: input, shape index: {}]   ;;  %s1130_s5 = inlined_call_operand.vmem [shape: f32[1,64], index: 5, kind: input, shape index: {}]   ;;  %s1131_s6 = inlined_call_operand.vmem [shape: f32[2,16,64], index: 6, kind: output, shape index: {}]  }
   0x1   :  { %s889_s23 = smov 0  }
   0x2 LB: > { %s28_s24 = sadd.s32 1, %s843_s22  ;;  %p719_p0 = scmp.ge.s32.totalorder %s847_s23, 1  ;;  %s847_s23 = sphi %s889_s23, %s16_s23   ;;  %s843_s22 = sphi %s887_s22, %s1133_s22   ;;  %s839_s21 = sphi %s885_s21, %s1132_s21  }
   0x3   : > { %p30_p1 = scmp.ge.s32.totalorder %s28_s24, 2  ;;  %p226_p2 = scmp.lt.s32.totalorder %s847_s23, 3 }
   0x5   : > { %s1135_s24 = smov (%p30_p1, %s28_s24), 0  ;;  %p227_p3 = pnand %p719_p0, %p226_p2 }
   0x6   : > { %p260_p4 = scmp.lt.s32.totalorder (!%p227_p3), %s839_s21, 1  ;;  %s849_s29 = smov (!%p227_p3), 120  }
   0x7   : > { %230 = sbr.rel (%p227_p3) target bundleno = 351 (0x15f), region = 44 }
   0xc   : > { %v754_v0 = vld [vmem:[%s1126_s1 + $0xe8] sm:$0xff]  ;;  %v753_v1 = vld [vmem:[%s1126_s1 + $0xe0] sm:$0xff]  ;;  %v735_v2 = vld [vmem:[%s1126_s1 + $0x98] sm:$0xff]  ;;  %s1137_s21 = smov (!%p260_p4, %s839_s21), 1  ;;  %vm306_vm0 = vcmask 654336   ;;  %vm497_vm2 = vcmask 1046528  }
   0xd   : > { %408 = vmatpush.msra.mxu2 %v754_v0  ;;  %322 = vmatpush.msra.mxu0 %v735_v2  ;;  %v289_v3 = vld [vmem:[%s1126_s1 + $0x48] sm:$0xff]  ;;  %v734_v4 = vld [vmem:[%s1126_s1 + $0x90] sm:$0xff]  ;;  %v752_v5 = vld [vmem:[%s1126_s1 + $0xd8] sm:$0xff]  ;;  %s796_s25 = smul.u32 24, %s1137_s21  ;;  %vm503_vm3 = vcmask 588800   ;;  %vm568_vm4 = vcmask 1045504  }
   0xe   : > { %357 = vmatpush.msra.mxu1 %v289_v3  ;;  %v288_v6 = vld [vmem:[%s1126_s1 + $0x40] sm:$0xff]  ;;  %v733_v7 = vld [vmem:[%s1126_s1 + $0x88] sm:$0xff]  ;;  %v287_v8 = vld [vmem:[%s1126_s1 + $0x38] sm:$0xff]  ;;  %v448_v3 = vlaneseq  ;;  %s786_s30 = sshll.u32 %s1137_s21, 4  ;;  %vm623_vm6 = vcmask 523264  }
   0xf   : > { %409 = vmatpush.msra.mxu2 %v753_v1  ;;  %323 = vmatpush.msra.mxu0 %v734_v4  ;;  %v751_v9 = vld [vmem:[%s1126_s1 + $0xd0] sm:$0xff]  ;;  %v732_v10 = vld [vmem:[%s1126_s1 + $0x80] sm:$0xff]  ;;  %v750_v12 = vld [vmem:[%s1126_s1 + $0xc8] sm:$0xff]  ;;  %s264_s14 = scalar_lea.vmem %s1125_s0, %s796_s25  ;;  %s273_s9 = scalar_lea.vmem %s1131_s6, %s786_s30 }
  0x10   : > { %358 = vmatpush.msra.mxu1 %v288_v6  ;;  %v286_v11 = vld [vmem:[%s1126_s1 + $0x30] sm:$0xff]  ;;  %v731_v13 = vld [vmem:[%s1126_s1 + $0x78] sm:$0xff]  ;;  %v285_v14 = vld [vmem:[%s1126_s1 + $0x28] sm:$0xff] }
  0x11   : > { %410 = vmatpush.msra.mxu2 %v752_v5  ;;  %324 = vmatpush.msra.mxu0 %v733_v7  ;;  %v749_v15 = vld [vmem:[%s1126_s1 + $0xc0] sm:$0xff]  ;;  %v730_v16 = vld [vmem:[%s1126_s1 + $0x70] sm:$0xff]  ;;  %v748_v18 = vld [vmem:[%s1126_s1 + $0xb8] sm:$0xff] }
  0x12   : > { %359 = vmatpush.msra.mxu1 %v287_v8  ;;  %v284_v17 = vld [vmem:[%s1126_s1 + $0x20] sm:$0xff]  ;;  %v729_v19 = vld [vmem:[%s1126_s1 + $0x68] sm:$0xff]  ;;  %v283_v20 = vld [vmem:[%s1126_s1 + $0x18] sm:$0xff] }
  0x13   : > { %411 = vmatpush.msra.mxu2 %v751_v9  ;;  %325 = vmatpush.msra.mxu0 %v732_v10  ;;  %v747_v21 = vld [vmem:[%s1126_s1 + $0xb0] sm:$0xff]  ;;  %v728_v22 = vld [vmem:[%s1126_s1 + $0x60] sm:$0xff]  ;;  %v746_v24 = vld [vmem:[%s1126_s1 + $0xa8] sm:$0xff]  ;;  %v449_v10 = vshrl.u32 %v448_v3, 7 }
  0x14   : > { %360 = vmatpush.msra.mxu1 %v286_v11  ;;  %v282_v23 = vld [vmem:[%s1126_s1 + $0x10] sm:$0xff]  ;;  %v727_v25 = vld [vmem:[%s1126_s1 + $0x58] sm:$0xff]  ;;  %v281_v26 = vld [vmem:[%s1126_s1 + $0x8] sm:$0xff] }
  0x15   : > { %412 = vmatpush.msra.mxu2 %v750_v12  ;;  %326 = vmatpush.msra.mxu0 %v731_v13  ;;  %v745_v27 = vld [vmem:[%s1126_s1 + $0xa0] sm:$0xff]  ;;  %v726_v28 = vld [vmem:[%s1126_s1 + $0x50] sm:$0xff]  ;;  %v278_v35 = vld [vmem:[%s264_s14 + $0x8] sm:$0xff] }
  0x16   : > { %361 = vmatpush.msra.mxu1 %v285_v14  ;;  %v742_v29 = vld [vmem:[%s264_s14 + $0x2] sm:$0xff]  ;;  %v743_v33 = vld [vmem:[%s264_s14 + $0xa] sm:$0xff]  ;;  %v744_v36 = vld [vmem:[%s264_s14 + $0x12] sm:$0x3] }
  0x17   : > { %413 = vmatpush.msra.mxu2 %v749_v15  ;;  %327 = vmatpush.msra.mxu0 %v730_v16  ;;  %v280_v30 = vld [vmem:[%s1126_s1] sm:$0xff]  ;;  %v724_v34 = vld [vmem:[%s264_s14 + $0x9] sm:$0xff]  ;;  %v725_v37 = vld [vmem:[%s264_s14 + $0x11] sm:$0x3]  ;;  %v454_v16 = vadd.s32 4294967295, %v449_v10 }
  0x18   : > { %362 = vmatpush.msra.mxu1 %v284_v17  ;;  %v723_v31 = vld [vmem:[%s264_s14 + $0x1] sm:$0xff]  ;;  %v279_v38 = vld [vmem:[%s264_s14 + $0x10] sm:$0x3]  ;;  %613 = vrot.lane.b32.xlu0 %v742_v29, %s849_s29  ;;  %v764_v43 = vld [vmem:[%s1129_s4 + $0x78] sm:$0xff] }
  0x19   : > { %414 = vmatpush.msra.mxu2 %v748_v18  ;;  %328 = vmatpush.msra.mxu0 %v729_v19  ;;  %v277_v32 = vld [vmem:[%s264_s14] sm:$0xff]  ;;  %v766_v39 = vld [vmem:[%s1129_s4 + $0x88] sm:$0xff]  ;;  %v779_v40 = vld [vmem:[%s1129_s4 + $0xd0] sm:$0xff]  ;;  %vm457_vm1 = vcmp.ge.s32.totalorder %v454_v16, 0 }
  0x1a   : > { %363 = vmatpush.msra.mxu1 %v283_v20  ;;  %515 = vmatpush.msra.mxu3 %v766_v39  ;;  %v765_v41 = vld [vmem:[%s1129_s4 + $0x80] sm:$0xff]  ;;  %v778_v42 = vld [vmem:[%s1129_s4 + $0xc8] sm:$0xff]  ;;  %v763_v45 = vld [vmem:[%s1129_s4 + $0x70] sm:$0xff] }
  0x1b   : > { %415 = vmatpush.msra.mxu2 %v747_v21  ;;  %329 = vmatpush.msra.mxu0 %v728_v22  ;;  %v777_v44 = vld [vmem:[%s1129_s4 + $0xc0] sm:$0xff]  ;;  %v776_v46 = vld [vmem:[%s1129_s4 + $0xb8] sm:$0xff]  ;;  %v762_v47 = vld [vmem:[%s1129_s4 + $0x68] sm:$0xff] }
  0x1c   : > { %364 = vmatpush.msra.mxu1 %v282_v23  ;;  %516 = vmatpush.msra.mxu3 %v765_v41  ;;  %v775_v48 = vld [vmem:[%s1129_s4 + $0xb0] sm:$0xff]  ;;  %v761_v49 = vld [vmem:[%s1129_s4 + $0x60] sm:$0xff]  ;;  %v774_v50 = vld [vmem:[%s1129_s4 + $0xa8] sm:$0xff] }
  0x1d   : > { %416 = vmatpush.msra.mxu2 %v746_v24  ;;  %330 = vmatpush.msra.mxu0 %v727_v25  ;;  %v760_v51 = vld [vmem:[%s1129_s4 + $0x58] sm:$0xff]  ;;  %v773_v52 = vld [vmem:[%s1129_s4 + $0xa0] sm:$0xff]  ;;  %v759_v53 = vld [vmem:[%s1129_s4 + $0x50] sm:$0xff] }
  0x1e   : > { %365 = vmatpush.msra.mxu1 %v281_v26  ;;  %517 = vmatpush.msra.mxu3 %v764_v43  ;;  %v772_v54 = vld [vmem:[%s1129_s4 + $0x98] sm:$0xff]  ;;  %v758_v55 = vld [vmem:[%s1129_s4 + $0x48] sm:$0xff]  ;;  %v771_v56 = vld [vmem:[%s1129_s4 + $0x90] sm:$0xff]  ;;  %v451_v26 = vadd.s32 16, %v449_v10 }
  0x1f   : > { %417 = vmatpush.msra.mxu2 %v745_v27  ;;  %331 = vmatpush.msra.mxu0 %v726_v28  ;;  %v483_v57 = vld [vmem:[%s1129_s4 + $0x40] sm:$0xff]  ;;  %v482_v58 = vld [vmem:[%s1129_s4 + $0x38] sm:$0xff]  ;;  %v481_v59 = vld [vmem:[%s1129_s4 + $0x30] sm:$0xff] }
  0x20   : > { %755 = vmatmul.msk.f32.vlgmr.msra.gmra.mxu2 %vm306_vm0, %v742_v29  ;;  %366 = vmatpush.msra.mxu1 %v280_v30  ;;  %v480_v60 = vld [vmem:[%s1129_s4 + $0x28] sm:$0xff]  ;;  %v479_v61 = vld [vmem:[%s1129_s4 + $0x20] sm:$0xff]  ;;  %v478_v1 = vld [vmem:[%s1129_s4 + $0x18] sm:$0xff] }
  0x21   : > { %736 = vmatmul.msk.f32.vlgmr.msra.gmra.mxu0 %vm306_vm0, %v723_v31  ;;  %739 = vmatmul.msk.f32.vlgmr.msra.gmra.mxu1 %vm306_vm0, %v277_v32  ;;  %v477_v2 = vld [vmem:[%s1129_s4 + $0x10] sm:$0xff]  ;;  %v822_v4 = vld [vmem:[%s1127_s2] ss:$0 sm:$0xff]  ;;  %v476_v5 = vld [vmem:[%s1129_s4 + $0x8] sm:$0xff] }
  0x22   : > { %615 = vrot.lane.b32.xlu0 %v743_v33, %s849_s29  ;;  %585 = vmatpush.msrb.mxu0 %v779_v40  ;;  %v823_v8 = vld [vmem:[%s1128_s3] ss:$0 sm:$0xff] }
  0x23   : > { %787 = vmatpush.msrb.mxu1 %v779_v40  ;;  %518 = vmatpush.msra.mxu3 %v763_v45  ;;  %v475_v9 = vld [vmem:[%s1129_s4] sm:$0xff] }
  0x24   : > { %586 = vmatpush.msrb.mxu0 %v778_v42 }
  0x25   : > { %788 = vmatpush.msrb.mxu1 %v778_v42  ;;  %519 = vmatpush.msra.mxu3 %v762_v47 }
  0x26   : > { %587 = vmatpush.msrb.mxu0 %v777_v44 }
  0x27   : > { %789 = vmatpush.msrb.mxu1 %v777_v44  ;;  %520 = vmatpush.msra.mxu3 %v761_v49  ;;  %v824_v49 = vld [vmem:[%s1130_s5] ss:$0 sm:$0xff] }
  0x28   : > { %756 = vmatmul.msk.f32.gmra.mxu2 %vm306_vm0, %v743_v33  ;;  %588 = vmatpush.msrb.mxu0 %v776_v46 }
  0x29   : > { %737 = vmatmul.msk.f32.gmra.mxu0 %vm306_vm0, %v724_v34  ;;  %740 = vmatmul.msk.f32.gmra.mxu1 %vm306_vm0, %v278_v35  ;;  %v456_v34 = vadd.s32 4294967295, %v451_v26 }
  0x2a   : > { %790 = vmatpush.msrb.mxu1 %v776_v46  ;;  %589 = vmatpush.msrb.mxu0 %v775_v48 }
  0x2b   : > { %521 = vmatpush.msra.mxu3 %v760_v51  ;;  %vm462_vm5 = vcmp.lt.s32.totalorder %v456_v34, 16 }
  0x2c   : > { %791 = vmatpush.msrb.mxu1 %v775_v48  ;;  %590 = vmatpush.msrb.mxu0 %v774_v50 }
  0x2d   : > { %522 = vmatpush.msra.mxu3 %v759_v53 }
  0x2e   : > { %792 = vmatpush.msrb.mxu1 %v774_v50  ;;  %591 = vmatpush.msrb.mxu0 %v773_v52 }
  0x2f   : > { %523 = vmatpush.msra.mxu3 %v758_v55 }
  0x30   : > { %757 = vmatmul.msk.f32.gmra.mxu2 %vm306_vm0, %v744_v36  ;;  %793 = vmatpush.msrb.mxu1 %v773_v52 }
  0x31   : > { %738 = vmatmul.msk.f32.gmra.mxu0 %vm306_vm0, %v725_v37  ;;  %741 = vmatmul.msk.f32.gmra.mxu1 %vm306_vm0, %v279_v38 }
  0x32   : > { %592 = vmatpush.msrb.mxu0 %v772_v54  ;;  %794 = vmatpush.msrb.mxu1 %v772_v54 }
  0x33   : > { %542 = vmatpush.msrb.mxu3 %v483_v57 }
  0x34   : > { %593 = vmatpush.msrb.mxu0 %v771_v56  ;;  %795 = vmatpush.msrb.mxu1 %v771_v56 }
  0x35   : > { %543 = vmatpush.msrb.mxu3 %v482_v58 }
  0x37   : > { %544 = vmatpush.msrb.mxu3 %v481_v59 }
  0x39   : > { %545 = vmatpush.msrb.mxu3 %v480_v60 }
  0x3b   : > { %546 = vmatpush.msrb.mxu3 %v479_v61 }
  0x3d   : > { %547 = vmatpush.msrb.mxu3 %v478_v1 }
  0x3f   : > { %548 = vmatpush.msrb.mxu3 %v477_v2 }
  0x41   : > { %549 = vmatpush.msrb.mxu3 %v476_v5 }
  0x43   : > { %550 = vmatpush.msrb.mxu3 %v475_v9 }
  0x8a   : > { %v614_v51 = vpop.permute.xlu0 %613 }
  0x94   : > { %v616_v60 = vpop.permute.xlu0 %615 }
  0x9e   : > { %v333_v62 = vpop.f32.mrf.mxu0  ;;  %v368_v63 = vpop.f32.mrf.mxu1 }
  0x9f   : > { %v369_v0 = vadd.f32 %v368_v63, %v333_v62 }
  0xa3   : > { %v419_v6 = vpop.f32.mrf.mxu2 }
  0xa4   : > { %v428_v7 = vadd.f32 %v419_v6, %v369_v0 }
  0xa6   : > { %v435_v11 = vmul.f32 %v822_v4, %v428_v7  ;;  %v336_v12 = vpop.f32.mrf.mxu0  ;;  %v371_v13 = vpop.f32.mrf.mxu1 }
  0xa7   : > { %v372_v15 = vadd.f32 %v371_v13, %v336_v12 }
  0xa8   : > { %v442_v14 = vadd.f32 %v823_v8, %v435_v11 }
  0xaa   : > { %v445_v18 = vmax.f32 %v442_v14, 0.0 }
  0xab   : > { %v422_v17 = vpop.f32.mrf.mxu2 }
  0xac   : > { %v429_v19 = vadd.f32 %v422_v17, %v372_v15  ;;  %v472_v23 = vsel %vm457_vm1, %v445_v18, 0.0 }
  0xad   : > { %v498_v29 = vrot.slane %v472_v23, 1  ;;  %v569_v32 = vrot.slane %v472_v23, 2 }
  0xae   : > { %v436_v20 = vmul.f32 %v822_v4, %v429_v19  ;;  %v339_v21 = vpop.f32.mrf.mxu0  ;;  %v374_v22 = vpop.f32.mrf.mxu1 }
  0xaf   : > { %v375_v25 = vadd.f32 %v374_v22, %v339_v21 }
  0xb0   : > { %v443_v24 = vadd.f32 %v823_v8, %v436_v20 }
  0xb2   : > { %v446_v27 = vmax.f32 %v443_v24, 0.0 }
  0xb3   : > { %v425_v28 = vpop.f32.mrf.mxu2 }
  0xb4   : > { %v430_v30 = vadd.f32 %v425_v28, %v375_v25  ;;  %v499_v31 = vrot.slane %v446_v27, 1  ;;  %v570_v33 = vrot.slane %v446_v27, 2 }
  0xb6   : > { %v437_v35 = vmul.f32 %v822_v4, %v430_v30  ;;  %v500_v36 = vsel %vm497_vm2, %v498_v29, %v499_v31  ;;  %v571_v37 = vsel %vm568_vm4, %v569_v32, %v570_v33 }
  0xb7   : > { %767 = vmatmul.msk.f32.vlgmr.msra.gmra.mxu3 %vm503_vm3, %v500_v36  ;;  %780 = vmatmul.msk.f32.vlgmr.msrb.gmra.mxu0 %vm503_vm3, %v571_v37 }
  0xb8   : > { %v444_v38 = vadd.f32 %v823_v8, %v437_v35 }
  0xba   : > { %v447_v39 = vmax.f32 %v444_v38, 0.0 }
  0xbc   : > { %v474_v40 = vsel %vm462_vm5, %v447_v39, 0.0 }
  0xbd   : > { %v501_v41 = vrot.slane %v474_v40, 1  ;;  %v572_v42 = vrot.slane %v474_v40, 2 }
  0xbf   : > { %v502_v43 = vsel %vm497_vm2, %v499_v31, %v501_v41  ;;  %v573_v44 = vsel %vm568_vm4, %v570_v33, %v572_v42 }
  0xc0   : > { %768 = vmatmul.msk.f32.gmra.mxu3 %vm503_vm3, %v502_v43  ;;  %781 = vmatmul.msk.f32.vlgmr.msrb.gmra.mxu1 %vm503_vm3, %v573_v44 }
  0xc8   : > { %769 = vmatmul.msk.f32.vlgmr.msrb.gmra.mxu3 %vm503_vm3, %v472_v23 }
  0xd0   : > { %770 = vmatmul.msk.f32.gmra.mxu3 %vm503_vm3, %v446_v27 }
 0x134   : > { %v595_v50 = vpop.f32.mrf.mxu0 }
 0x13a   : > { %v525_v45 = vpop.f32.mrf.mxu3 }
 0x13d   : > { %v598_v58 = vpop.f32.mrf.mxu1 }
 0x143   : > { %v528_v46 = vpop.f32.mrf.mxu3 }
 0x14b   : > { %v552_v47 = vpop.f32.mrf.mxu3 }
 0x14c   : > { %v553_v48 = vadd.f32 %v552_v47, %v525_v45 }
 0x14e   : > { %v601_v52 = vadd.f32 %v595_v50, %v553_v48 }
 0x150   : > { %v609_v53 = vadd.f32 %v824_v49, %v601_v52 }
 0x152   : > { %v619_v54 = vadd.f32 %v614_v51, %v609_v53 }
 0x153   : > { %v555_v55 = vpop.f32.mrf.mxu3 }
 0x154   : > { %v621_v56 = vmax.f32 %v619_v54, 0.0  ;;  %v556_v57 = vadd.f32 %v555_v55, %v528_v46 }
 0x156   : > { %624 = vst.msk [vmem:[%s273_s9] sm:$0xff] %vm623_vm6, %v621_v56  ;;  %v602_v59 = vadd.f32 %v598_v58, %v556_v57 }
 0x158   : > { %v610_v61 = vadd.f32 %v824_v49, %v602_v59 }
 0x15a   : > { %v620_v62 = vadd.f32 %v616_v60, %v610_v61 }
 0x15c   : > { %v622_v63 = vmax.f32 %v620_v62, 0.0 }
 0x15e   : > { %625 = vst.msk [vmem:[%s273_s9 + $0x8] sm:$0xff] %vm623_vm6, %v622_v63 }
 0x15f PF: > { %s16_s23 = sadd.s32 1, %s847_s23   ;;  %s1132_s21 = smov %s843_s22 }
 0x160   : > { %p13_p5 = scmp.ge.s32.totalorder %s16_s23, 4   ;;  %s1133_s22 = smov %s1135_s24 }
 0x162   :  { %15 = sbr.rel (!%p13_p5) target bundleno = 2 (0x2), region = 81 }

</bundles_post_ra>
